<compile_context>
chip_gen: v7x
topology: tpu7x:2x2x1
jax: 0.10.0
libtpu: 0.0.40
codegen_flags: <defaults>
</compile_context>

<pallas_src>
import jax
import jax.numpy as jnp
from jax.experimental import pallas as pl
from jax.experimental.pallas import tpu as pltpu


def valuenet_kernel(x_ref, w1t_ref, p_ref, o_ref):
    # fc1 (MXU): [H, S] @ [S, TB] -> [H, TB], batch on lanes.
    h = jnp.dot(w1t_ref[...], x_ref[...], preferred_element_type=jnp.float32)
    # + b1 (column broadcast over lanes), ReLU  (VPU).
    h = jnp.maximum(h + p_ref[:, 0:1], 0.0)
    # fc2: VPU multiply by w2 column + sublane reduction -> lane-dense [1, TB].
    v = jnp.sum(h * p_ref[:, 1:2], axis=0, keepdims=True)
    # + b2 (scalar broadcast).
    o_ref[...] = (v + p_ref[0:1, 2:3]).astype(o_ref.dtype)


def pack_params(b1, w2, b2):
    """Pack b1 [H], w2 [H], b2 [1] into one (H, 3) f32 tile (single DMA).

    col 0 = b1, col 1 = w2 (fc2 weight as a column), col 2 row 0 = b2.
    """
    H = b1.shape[-1]
    p = jnp.zeros((H, 3), jnp.float32)
    p = p.at[:, 0].set(jnp.reshape(b1, (H,)))
    p = p.at[:, 1].set(jnp.reshape(w2, (H,)))
    p = p.at[0, 2].set(jnp.reshape(b2, ()))
    return p


def value_net_forward_fm(x_fm, w1t, packed, *, block_b=16384):
    """Fast path.  x_fm: [S, B] f32 (feature-major: batch on the last axis),
    w1t: [H, S] f32 (PyTorch Linear weight layout), packed: [H, 3] f32.
    Returns [B, 1] f32."""
    S, B = x_fm.shape
    H = w1t.shape[0]

    if B > block_b:
        TB = max(128, (block_b // 128) * 128)   # lane-aligned tile
    else:
        TB = B                                  # single block == full array dims
    nb = pl.cdiv(B, TB)

    out = pl.pallas_call(
        valuenet_kernel,
        # Output width nb*TB >= B: every output block is fully in-bounds
        # (lane-dense unmasked stores); the tail columns are discarded below.
        out_shape=jax.ShapeDtypeStruct((1, nb * TB), jnp.float32),
        grid_spec=pltpu.PrefetchScalarGridSpec(
            num_scalar_prefetch=0,
            grid=(nb,),                                     # batch tiles
            in_specs=[
                pl.BlockSpec((S, TB), lambda i: (0, i)),    # x: tiled over lanes
                pl.BlockSpec((H, S), lambda i: (0, 0)),     # w1t: resident
                pl.BlockSpec((H, 3), lambda i: (0, 0)),     # packed b1/w2/b2
            ],
            out_specs=pl.BlockSpec((1, TB), lambda i: (0, i)),
        ),
        compiler_params=pltpu.CompilerParams(
            dimension_semantics=("parallel",),              # megacore on v7x
            vmem_limit_bytes=48 * 1024 * 1024,              # < v7x 64 MiB/TC physical
        ),
    )(x_fm, w1t, packed)
    return out[0, :B].reshape(B, 1)


def value_net_forward(x, w1t, packed, *, block_b=16384):
    """Convenience wrapper for batch-major x [B, S] (the PyTorch layout).

    NOTE: the transpose here costs one extra HBM pass over x; rollout
    producers should store states feature-major and call value_net_forward_fm.
    """
    return value_net_forward_fm(jnp.transpose(x), w1t, packed, block_b=block_b)


def init_params(key, state_dim, hidden_dim):
    # PyTorch nn.Linear default init: U(-1/sqrt(fan_in), 1/sqrt(fan_in)).
    k1, k2, k3, k4 = jax.random.split(key, 4)
    lim1 = 1.0 / jnp.sqrt(jnp.float32(state_dim))
    lim2 = 1.0 / jnp.sqrt(jnp.float32(hidden_dim))
    w1t = jax.random.uniform(k1, (hidden_dim, state_dim), jnp.float32, -lim1, lim1)
    b1 = jax.random.uniform(k2, (hidden_dim,), jnp.float32, -lim1, lim1)
    w2 = jax.random.uniform(k3, (hidden_dim,), jnp.float32, -lim2, lim2)
    b2 = jax.random.uniform(k4, (1,), jnp.float32, -lim2, lim2)
    return w1t, b1, w2, b2


def reference(x, w1t, b1, w2, b2):
    # x: [B, S] batch-major, PyTorch semantics.
    h = jnp.maximum(x @ w1t.T + b1, 0.0)
    return h @ w2.reshape(-1, 1) + b2


if __name__ == "__main__":
    state_dim = 4      # CartPole-v0 observation space
    hidden_dim = 128
    batch = 8

    key = jax.random.PRNGKey(0)
    kx, kp, kx2 = jax.random.split(key, 3)
    w1t, b1, w2, b2 = init_params(kp, state_dim, hidden_dim)
    packed = pack_params(b1, w2, b2)

    # Small batch through the batch-major convenience wrapper (module layout).
    x = jax.random.normal(kx, (batch, state_dim), jnp.float32)
    out = value_net_forward(x, w1t, packed)
    jax.block_until_ready(out)
    ref = reference(x, w1t, b1, w2, b2)
    assert out.shape == (batch, 1)
    assert jnp.allclose(out, ref, atol=1e-5), "mismatch vs reference (small batch)"

    # Larger, non-multiple batch through the feature-major fast path with a
    # small block_b so the grid has several steps and a ragged last x block
    # (exercises clamped partial reads; outputs stay in-bounds).
    B2 = 1029
    x2_fm = jax.random.normal(kx2, (state_dim, B2), jnp.float32)  # producer stores [S, B]
    out2 = value_net_forward_fm(x2_fm, w1t, packed, block_b=512)
    jax.block_until_ready(out2)
    ref2 = reference(x2_fm.T, w1t, b1, w2, b2)
    assert out2.shape == (B2, 1)
    assert jnp.allclose(out2, ref2, atol=1e-4), "mismatch vs reference (tiled batch)"

    print("KERNEL_OK")
</pallas_src>

<mosaic_0001>
module attributes {stable_mosaic.version = 11 : i64} {
  func.func @valuenet_kernel(%arg0: i32, %arg1: memref<4x8xf32, #tpu.memory_space<vmem>>, %arg2: memref<128x4xf32, #tpu.memory_space<vmem>>, %arg3: memref<128x3xf32, #tpu.memory_space<vmem>>, %arg4: memref<1x8xf32, #tpu.memory_space<vmem>>) attributes {dimension_semantics = [#tpu.dimension_semantics<parallel>], iteration_bounds = array<i64: 1>, scalar_prefetch = 0 : i64, scratch_operands = 0 : i64, tpu.core_type = #tpu.core_type<tc>, window_params = [{transform_indices = @transform_0, window_bounds = array<i64: 4, 8>}, {pipeline_mode = #tpu.pipeline_mode<synchronous>, transform_indices = @transform_1, window_bounds = array<i64: 128, 4>}, {pipeline_mode = #tpu.pipeline_mode<synchronous>, transform_indices = @transform_2, window_bounds = array<i64: 128, 3>}, {transform_indices = @transform_3, window_bounds = array<i64: 1, 8>}]} {
    %c0 = arith.constant 0 : index
    %c0_0 = arith.constant 0 : index
    %0 = vector.load %arg2[%c0, %c0_0] : memref<128x4xf32, #tpu.memory_space<vmem>>, vector<128x4xf32>
    %c0_1 = arith.constant 0 : index
    %c0_2 = arith.constant 0 : index
    %1 = vector.load %arg1[%c0_1, %c0_2] : memref<4x8xf32, #tpu.memory_space<vmem>>, vector<4x8xf32>
    %cst = arith.constant dense<0.000000e+00> : vector<128x8xf32>
    %2 = tpu.matmul %0, %1, %cst {dimension_numbers = #tpu.dot_dimension_numbers<[1], [0], [0], [1], [0, 0, 1, 1], [], []>} : vector<128x4xf32>, vector<4x8xf32>, vector<128x8xf32> -> vector<128x8xf32>
    %c0_3 = arith.constant 0 : index
    %c0_4 = arith.constant 0 : index
    %3 = vector.load %arg3[%c0_3, %c0_4] : memref<128x3xf32, #tpu.memory_space<vmem>>, vector<128x1xf32>
    %4 = vector.broadcast %3 : vector<128x1xf32> to vector<128x8xf32>
    %5 = arith.addf %2, %4 : vector<128x8xf32>
    %cst_5 = arith.constant 0.000000e+00 : f32
    %6 = vector.broadcast %cst_5 : f32 to vector<128x8xf32>
    %7 = arith.maximumf %5, %6 : vector<128x8xf32>
    %c0_6 = arith.constant 0 : index
    %c1 = arith.constant 1 : index
    %8 = vector.load %arg3[%c0_6, %c1] : memref<128x3xf32, #tpu.memory_space<vmem>>, vector<128x1xf32>
    %9 = vector.broadcast %8 : vector<128x1xf32> to vector<128x8xf32>
    %10 = arith.mulf %7, %9 : vector<128x8xf32>
    %cst_7 = arith.constant dense<0.000000e+00> : vector<8xf32>
    %11 = vector.multi_reduction <add>, %10, %cst_7 [0] : vector<128x8xf32> to vector<8xf32>
    %12 = vector.shape_cast %11 : vector<8xf32> to vector<1x8xf32>
    %c0_8 = arith.constant 0 : index
    %c2 = arith.constant 2 : index
    %13 = vector.load %arg3[%c0_8, %c2] : memref<128x3xf32, #tpu.memory_space<vmem>>, vector<1x1xf32>
    %14 = vector.broadcast %13 : vector<1x1xf32> to vector<1x8xf32>
    %15 = arith.addf %12, %14 : vector<1x8xf32>
    %c0_9 = arith.constant 0 : index
    %c0_10 = arith.constant 0 : index
    %16 = vector.load %arg4[%c0_9, %c0_10] : memref<1x8xf32, #tpu.memory_space<vmem>>, vector<1x8xf32>
    tpu.vector_store %arg4[%c0_9, %c0_10], %15 {strides = array<i32>} : memref<1x8xf32, #tpu.memory_space<vmem>>, vector<1x8xf32>,
    return
  }
  func.func @transform_0(%arg0: i32) -> (i32, i32) {
    %c0_i32 = arith.constant 0 : i32
    %c0_i32_0 = arith.constant 0 : i32
    return %c0_i32, %arg0 : i32, i32
  }
  func.func @transform_1(%arg0: i32) -> (i32, i32) {
    %c0_i32 = arith.constant 0 : i32
    %c0_i32_0 = arith.constant 0 : i32
    %c0_i32_1 = arith.constant 0 : i32
    return %c0_i32, %c0_i32_0 : i32, i32
  }
  func.func @transform_2(%arg0: i32) -> (i32, i32) {
    %c0_i32 = arith.constant 0 : i32
    %c0_i32_0 = arith.constant 0 : i32
    %c0_i32_1 = arith.constant 0 : i32
    return %c0_i32, %c0_i32_0 : i32, i32
  }
  func.func @transform_3(%arg0: i32) -> (i32, i32) {
    %c0_i32 = arith.constant 0 : i32
    %c0_i32_0 = arith.constant 0 : i32
    return %c0_i32, %arg0 : i32, i32
  }
}

</mosaic_0001>

<bundles_post_ra>
// kernel: tpu_custom_call.1
= control target key start
LH: loop header
LB: loop body
LE: loop exit
PB: predicated region body
PF: predicated region fallthrough
CT: control target
= control target key end

     0   :  { %vm177_vm0 = vcmask 1043456   ;;  %vm128_vm1 = vcmask 31744   ;;  %v581_v12 = vmov 0   ;;  %s763_s0 = inlined_call_operand.vmem [shape: f32[4,8], index: 0, kind: input, shape index: {}]   ;;  %s764_s1 = inlined_call_operand.vmem [shape: f32[128,4], index: 1, kind: input, shape index: {}]   ;;  %s765_s2 = inlined_call_operand.vmem [shape: f32[128,3], index: 2, kind: input, shape index: {}]   ;;  %s766_s3 = inlined_call_operand.hbm [shape: f32[1,8], index: 3, kind: output, shape index: {}]  }
   0x1   :  { %v31_v0 = vld [vmem:[%s763_s0] sm:$0xf]  ;;  %v16_v3 = vld [vmem:[%s764_s1 + $0x8] sm:$0xff]  ;;  %v17_v5 = vld [vmem:[%s764_s1 + $0x10] sm:$0xff]  ;;  %549 = vset.pattern.permute.xlu0 %v581_v12  ;;  %550 = vset.pattern.permute.xlu1 %v581_v12 }
   0x2   :  { %v15_v1 = vld [vmem:[%s764_s1] sm:$0xff]  ;;  %517 = vmatprep.subr.msk.mxu0 %vm177_vm0, %v31_v0  ;;  %543 = vmatprep.subr.msk.mxu1 %vm177_vm0, %v31_v0  ;;  %v24_v4 = vld [vmem:[%s764_s1 + $0x48] sm:$0xff]  ;;  %v25_v6 = vld [vmem:[%s764_s1 + $0x50] sm:$0xff] }
   0x3   :  { %v23_v2 = vld [vmem:[%s764_s1 + $0x40] sm:$0xff]  ;;  %518 = vmatpush3.msk.msra.mxu0 %vm177_vm0, %v31_v0  ;;  %544 = vmatpush3.msk.msra.mxu1 %vm177_vm0, %v31_v0  ;;  %v18_v8 = vld [vmem:[%s764_s1 + $0x18] sm:$0xff]  ;;  %v34_v13 = vld [vmem:[%s765_s2 + $0x10] sm:$0xff] }
   0x4   :  { %519 = vmatprep.mubr.msk.f32.mxu0 %vm128_vm1, %v15_v1  ;;  %531 = vmatprep.mubr.msk.f32.mxu1 %vm128_vm1, %v23_v2  ;;  %v32_v7 = vld [vmem:[%s765_s2] sm:$0xff]  ;;  %v26_v9 = vld [vmem:[%s764_s1 + $0x58] sm:$0xff]  ;;  %v33_v14 = vld [vmem:[%s765_s2 + $0x8] sm:$0xff] }
   0x5   :  { %520 = vmatmul.mubr.msk.f32.vlgmr.msra.gmra.mrb[0].mxu0 %vm128_vm1, %v16_v3  ;;  %532 = vmatmul.mubr.msk.f32.vlgmr.msra.gmra.mrb[0].mxu1 %vm128_vm1, %v24_v4  ;;  %v19_v10 = vld [vmem:[%s764_s1 + $0x20] sm:$0xff]  ;;  %v35_v15 = vld [vmem:[%s765_s2 + $0x18] sm:$0xff]  ;;  %v20_v16 = vld [vmem:[%s764_s1 + $0x28] sm:$0xff] }
   0x6   :  { %522 = vmatprep.mubr.msk.f32.mxu0 %vm128_vm1, %v17_v5  ;;  %534 = vmatprep.mubr.msk.f32.mxu1 %vm128_vm1, %v25_v6  ;;  %v27_v11 = vld [vmem:[%s764_s1 + $0x60] sm:$0xff]  ;;  %v28_v17 = vld [vmem:[%s764_s1 + $0x68] sm:$0xff]  ;;  %v21_v18 = vld [vmem:[%s764_s1 + $0x30] sm:$0xff] }
   0x7   :  { %50 = vperm.xlu0 %549, %v32_v7   ;;  %60 = vperm.xlu1 %550, %v34_v13   ;;  %v29_v19 = vld [vmem:[%s764_s1 + $0x70] sm:$0xff] }
   0x9   :  { %523 = vmatmul.mubr.msk.f32.gmra.mrb[2].mxu0 %vm128_vm1, %v18_v8  ;;  %535 = vmatmul.mubr.msk.f32.gmra.mrb[2].mxu1 %vm128_vm1, %v26_v9 }
   0xa   :  { %525 = vmatprep.mubr.msk.f32.mxu0 %vm128_vm1, %v19_v10  ;;  %537 = vmatprep.mubr.msk.f32.mxu1 %vm128_vm1, %v27_v11 }
   0xb   :  { %55 = vperm.xlu0 %549, %v33_v14   ;;  %65 = vperm.xlu1 %550, %v35_v15  }
   0xc   :  { %8 = vsyncpa [#allocation3], 0  ;;  %v36_v20 = vld [vmem:[%s765_s2 + $0x20] sm:$0xff]  ;;  %v22_v21 = vld [vmem:[%s764_s1 + $0x38] sm:$0xff]  ;;  %v582_v23 = vmov 1   ;;  %v583_v35 = vmov 2  }
   0xd   :  { %526 = vmatmul.mubr.msk.f32.gmra.mrb[4].mxu0 %vm128_vm1, %v20_v16  ;;  %538 = vmatmul.mubr.msk.f32.gmra.mrb[4].mxu1 %vm128_vm1, %v28_v17  ;;  %v30_v22 = vld [vmem:[%s764_s1 + $0x78] sm:$0xff]  ;;  %v37_v24 = vld [vmem:[%s765_s2 + $0x28] sm:$0xff]  ;;  %v38_v25 = vld [vmem:[%s765_s2 + $0x30] sm:$0xff]  ;;  %vm422_vm2 = vcmask 64512   ;;  %vm467_vm3 = vcmask 57344  }
   0xe   :  { %528 = vmatprep.mubr.msk.f32.mxu0 %vm128_vm1, %v21_v18  ;;  %540 = vmatprep.mubr.msk.f32.mxu1 %vm128_vm1, %v29_v19  ;;  %v39_v26 = vld [vmem:[%s765_s2 + $0x38] sm:$0xff]  ;;  %v40_v27 = vld [vmem:[%s765_s2 + $0x40] sm:$0xff]  ;;  %v41_v28 = vld [vmem:[%s765_s2 + $0x48] sm:$0xff] }
   0xf   :  { %70 = vperm.xlu0 %549, %v36_v20   ;;  %551 = vset.pattern.permute.xlu1 %v582_v23  ;;  %v42_v29 = vld [vmem:[%s765_s2 + $0x50] sm:$0xff]  ;;  %v43_v30 = vld [vmem:[%s765_s2 + $0x58] sm:$0xff]  ;;  %v44_v31 = vld [vmem:[%s765_s2 + $0x60] sm:$0xff] }
  0x10   :  { %343 = vperm.xlu1 %551, %v32_v7   ;;  %v45_v32 = vld [vmem:[%s765_s2 + $0x68] sm:$0xff]  ;;  %v46_v33 = vld [vmem:[%s765_s2 + $0x70] sm:$0xff]  ;;  %v47_v34 = vld [vmem:[%s765_s2 + $0x78] sm:$0xff] }
  0x11   :  { %529 = vmatmul.mubr.msk.f32.gmra.mrb[6].mxu0 %vm128_vm1, %v22_v21  ;;  %541 = vmatmul.mubr.msk.f32.gmra.mrb[6].mxu1 %vm128_vm1, %v30_v22  ;;  %v460_v36 = vld [vmem:[%s765_s2] sm:$0x1]  ;;  %s584_s2 = smov [#allocation2]  }
  0x12   :  { %s475_s22 = sshll.u32 %s584_s2, 4  ;;  %s476_s22 = int_to_ptr.vmem [resolvable:$true] %s475_s22 }
  0x13   :  { %552 = vset.pattern.permute.xlu0 %v582_v23  ;;  %s557_s23 = scalar_lea.vmem %s476_s22, 16  ;;  %s561_s24 = scalar_lea.vmem %s476_s22, 32 }
  0x14   :  { %347 = vperm.xlu0 %552, %v33_v14   ;;  %351 = vperm.xlu1 %551, %v34_v13   ;;  %p558_p0 = scmp.ne.s32.totalorder %s476_s22, %s557_s23  ;;  %p562_p1 = scmp.lt.s32.totalorder %s476_s22, %s476_s22 }
  0x15   :  { %p563_p2 = scmp.lt.s32.totalorder %s561_s24, %s557_s23 }
  0x17   :  { %p564_p3 = por %p563_p2, %p562_p1 }
  0x18   :  { %355 = vperm.xlu0 %552, %v35_v15   ;;  %553 = vset.pattern.permute.xlu1 %v581_v12 }
  0x19   :  { %75 = vperm.xlu1 %553, %v37_v24   ;;  %p565_p4 = pnand %p564_p3, %p558_p0 }
  0x1c   :  { %359 = vperm.xlu0 %552, %v36_v20  }
  0x1d   :  { %80 = vperm.xlu1 %553, %v38_v25  }
  0x20   :  { %363 = vperm.xlu0 %552, %v37_v24  }
  0x21   :  { %85 = vperm.xlu1 %553, %v39_v26  }
  0x24   :  { %367 = vperm.xlu0 %552, %v38_v25  }
  0x25   :  { %90 = vperm.xlu1 %553, %v40_v27  }
  0x28   :  { %371 = vperm.xlu0 %552, %v39_v26  }
  0x29   :  { %95 = vperm.xlu1 %553, %v41_v28  }
  0x2c   :  { %375 = vperm.xlu0 %552, %v40_v27  }
  0x2d   :  { %100 = vperm.xlu1 %553, %v42_v29  }
  0x30   :  { %379 = vperm.xlu0 %552, %v41_v28  }
  0x31   :  { %105 = vperm.xlu1 %553, %v43_v30  }
  0x34   :  { %383 = vperm.xlu0 %552, %v42_v29  }
  0x35   :  { %110 = vperm.xlu1 %553, %v44_v31  }
  0x38   :  { %387 = vperm.xlu0 %552, %v43_v30  }
  0x39   :  { %115 = vperm.xlu1 %553, %v45_v32  }
  0x3c   :  { %391 = vperm.xlu0 %552, %v44_v31  }
  0x3d   :  { %120 = vperm.xlu1 %553, %v46_v33  }
  0x40   :  { %395 = vperm.xlu0 %552, %v45_v32  }
  0x41   :  { %125 = vperm.xlu1 %553, %v47_v34  }
  0x44   :  { %403 = vperm.xlu0 %552, %v47_v34  }
  0x45   :  { %554 = vset.pattern.permute.xlu1 %v582_v23 }
  0x46   :  { %399 = vperm.xlu1 %554, %v46_v33  }
  0x48   :  { %556 = vset.pattern.permute.xlu0 %v583_v35 }
  0x4a   :  { %555 = vset.pattern.permute.xlu1 %v583_v35 }
  0x4b   :  { %463 = vperm.xlu1 %555, %v460_v36  }
  0x86   :  { %v61_v37 = vpop.permute.xlu1 %60  ;;  %v51_v38 = vpop.permute.xlu0 %50 }
  0x8a   :  { %v66_v39 = vpop.permute.xlu1 %65  ;;  %v56_v40 = vpop.permute.xlu0 %55 }
  0x8e   :  { %v71_v42 = vpop.permute.xlu0 %70 }
  0x8f   :  { %v344_v41 = vpop.permute.xlu1 %343 }
  0x93   :  { %v352_v43 = vpop.permute.xlu1 %351  ;;  %v348_v44 = vpop.permute.xlu0 %347 }
  0x97   :  { %v356_v46 = vpop.permute.xlu0 %355 }
  0x98   :  { %v76_v45 = vpop.permute.xlu1 %75 }
  0x9b   :  { %v360_v48 = vpop.permute.xlu0 %359 }
  0x9c   :  { %v81_v47 = vpop.permute.xlu1 %80 }
  0x9f   :  { %v364_v50 = vpop.permute.xlu0 %363 }
  0xa0   :  { %v86_v49 = vpop.permute.xlu1 %85 }
  0xa3   :  { %v723_v52 = vpop.permute.xlu0 %367 }
  0xa4   :  { %v91_v51 = vpop.permute.xlu1 %90 }
  0xa7   :  { %v725_v54 = vpop.permute.xlu0 %371 }
  0xa8   :  { %v96_v53 = vpop.permute.xlu1 %95 }
  0xab   :  { %v727_v56 = vpop.permute.xlu0 %375 }
  0xac   :  { %v101_v55 = vpop.permute.xlu1 %100 }
  0xaf   :  { %v729_v58 = vpop.permute.xlu0 %379 }
  0xb0   :  { %v106_v57 = vpop.permute.xlu1 %105 }
  0xb3   :  { %v384_v12 = vpop.permute.xlu0 %383 }
  0xb4   :  { %v111_v1 = vpop.permute.xlu1 %110 }
  0xb8   :  { %v116_v26 = vpop.permute.xlu1 %115 }
  0xd8   :  { %v521_v59 = vpop.f32.mrb[0].mxu0  ;;  %v533_v60 = vpop.f32.mrb[0].mxu1 }
  0xd9   :  { %v253_v61 = vadd.f32 %v521_v59, %v56_v40  ;;  %v247_v62 = vpop.f32.mrb[1].mxu0  ;;  %v287_v63 = vpop.f32.mrb[1].mxu1  ;;  %v293_v33 = vadd.f32 %v533_v60, %v96_v53 }
  0xda   :  { %v248_v0 = vadd.f32 %v247_v62, %v51_v38  ;;  %v288_v28 = vadd.f32 %v287_v63, %v91_v51 }
  0xdb   :  { %v327_v2 = vmax.f32 %v253_v61, 0.0  ;;  %v335_v61 = vmax.f32 %v293_v33, 0.0 }
  0xdc   :  { %v326_v3 = vmax.f32 %v248_v0, 0.0  ;;  %v524_v4 = vpop.f32.mrb[2].mxu0  ;;  %v536_v5 = vpop.f32.mrb[2].mxu1 }
  0xdd   :  { %v407_v6 = vmul.f32 %v348_v44, %v327_v2  ;;  %v263_v7 = vadd.f32 %v524_v4, %v66_v39  ;;  %v257_v8 = vpop.f32.mrb[3].mxu0  ;;  %v297_v9 = vpop.f32.mrb[3].mxu1  ;;  %v303_v53 = vadd.f32 %v536_v5, %v106_v57 }
  0xde   :  { %v406_v10 = vmul.f32 %v344_v41, %v326_v3  ;;  %v258_v11 = vadd.f32 %v257_v8, %v61_v37 }
  0xdf   :  { %v424_v13 = vsel %vm422_vm2, %v407_v6, 0.0  ;;  %v329_v14 = vmax.f32 %v263_v7, 0.0  ;;  %v415_v6 = vmul.f32 %v729_v58, %v335_v61  ;;  %v337_v7 = vmax.f32 %v303_v53, 0.0 }
  0xe0   :  { %v423_v15 = vsel %vm422_vm2, %v406_v10, 0.0  ;;  %v328_v16 = vmax.f32 %v258_v11, 0.0  ;;  %v527_v17 = vpop.f32.mrb[4].mxu0  ;;  %v539_v18 = vpop.f32.mrb[4].mxu1 }
  0xe1   :  { %v425_v19 = vadd.f32 %v424_v13, %v423_v15  ;;  %v273_v20 = vadd.f32 %v527_v17, %v76_v45  ;;  %v267_v21 = vpop.f32.mrb[5].mxu0  ;;  %v307_v22 = vpop.f32.mrb[5].mxu1  ;;  %v409_v23 = vmul.f32 %v356_v46, %v329_v14  ;;  %v334_v45 = vmax.f32 %v288_v28, 0.0 }
  0xe2   :  { %v408_v24 = vmul.f32 %v352_v43, %v328_v16  ;;  %v268_v25 = vadd.f32 %v267_v21, %v71_v42  ;;  %v388_v43 = vpop.permute.xlu0 %387  ;;  %v298_v46 = vadd.f32 %v297_v9, %v101_v55  ;;  %v308_v2 = vadd.f32 %v307_v22, %v111_v1 }
  0xe3   :  { %v331_v27 = vmax.f32 %v273_v20, 0.0  ;;  %v428_v38 = vsel %vm422_vm2, %v409_v23, 0.0  ;;  %v313_v57 = vadd.f32 %v539_v18, %v116_v26  ;;  %v440_v1 = vsel %vm422_vm2, %v415_v6, 0.0 }
  0xe4   :  { %v426_v29 = vsel %vm422_vm2, %v408_v24, 0.0  ;;  %v330_v30 = vmax.f32 %v268_v25, 0.0  ;;  %v530_v31 = vpop.f32.mrb[6].mxu0  ;;  %v542_v32 = vpop.f32.mrb[6].mxu1  ;;  %v336_v0 = vmax.f32 %v298_v46, 0.0  ;;  %v338_v9 = vmax.f32 %v308_v2, 0.0 }
  0xe5   :  { %v427_v34 = vadd.f32 %v426_v29, %v425_v19  ;;  %v283_v35 = vadd.f32 %v530_v31, %v86_v49  ;;  %v277_v36 = vpop.f32.mrb[7].mxu0  ;;  %v317_v37 = vpop.f32.mrb[7].mxu1  ;;  %v411_v39 = vmul.f32 %v364_v50, %v331_v27  ;;  %v417_v13 = vmul.f32 %v388_v43, %v337_v7 }
  0xe6   :  { %v410_v40 = vmul.f32 %v360_v48, %v330_v30  ;;  %v278_v41 = vadd.f32 %v277_v36, %v81_v47  ;;  %v121_v50 = vpop.permute.xlu1 %120  ;;  %v414_v47 = vmul.f32 %v727_v56, %v334_v45  ;;  %v392_v3 = vpop.permute.xlu0 %391  ;;  %v339_v14 = vmax.f32 %v313_v57, 0.0 }
  0xe7   :  { %v429_v42 = vadd.f32 %v428_v38, %v427_v34  ;;  %v333_v44 = vmax.f32 %v283_v35, 0.0  ;;  %v432_v49 = vsel %vm422_vm2, %v411_v39, 0.0  ;;  %v318_v10 = vadd.f32 %v317_v37, %v121_v50 }
  0xe8   :  { %v430_v51 = vsel %vm422_vm2, %v410_v40, 0.0  ;;  %v332_v59 = vmax.f32 %v278_v41, 0.0  ;;  %v418_v18 = vmul.f32 %v392_v3, %v338_v9  ;;  %v444_v22 = vsel %vm422_vm2, %v417_v13, 0.0 }
  0xe9   :  { %v431_v62 = vadd.f32 %v430_v51, %v429_v42  ;;  %v413_v60 = vmul.f32 %v725_v54, %v333_v44  ;;  %v438_v54 = vsel %vm422_vm2, %v414_v47, 0.0  ;;  %v340_v19 = vmax.f32 %v318_v10, 0.0 }
  0xea   :  { %v412_v63 = vmul.f32 %v723_v52, %v332_v59  ;;  %v416_v52 = vmul.f32 %v384_v12, %v336_v0  ;;  %v126_v11 = vpop.permute.xlu1 %125  ;;  %v396_v16 = vpop.permute.xlu0 %395  ;;  %v446_v25 = vsel %vm422_vm2, %v418_v18, 0.0 }
  0xeb   :  { %v433_v48 = vadd.f32 %v432_v49, %v431_v62  ;;  %v436_v5 = vsel %vm422_vm2, %v413_v60, 0.0  ;;  %v323_v15 = vadd.f32 %v542_v32, %v126_v11  ;;  %v419_v12 = vmul.f32 %v396_v16, %v339_v14 }
  0xec   :  { %v434_v55 = vsel %vm422_vm2, %v412_v63, 0.0  ;;  %v442_v58 = vsel %vm422_vm2, %v416_v52, 0.0 }
  0xed   :  { %v435_v4 = vadd.f32 %v434_v55, %v433_v48  ;;  %v341_v23 = vmax.f32 %v323_v15, 0.0  ;;  %v448_v29 = vsel %vm422_vm2, %v419_v12, 0.0 }
  0xee   :  { %v400_v20 = vpop.permute.xlu1 %399  ;;  %v404_v27 = vpop.permute.xlu0 %403 }
  0xef   :  { %v437_v8 = vadd.f32 %v436_v5, %v435_v4  ;;  %v420_v26 = vmul.f32 %v400_v20, %v340_v19  ;;  %v421_v30 = vmul.f32 %v404_v27, %v341_v23 }
  0xf1   :  { %v439_v56 = vadd.f32 %v438_v54, %v437_v8  ;;  %v450_v32 = vsel %vm422_vm2, %v420_v26, 0.0  ;;  %v452_v34 = vsel %vm422_vm2, %v421_v30, 0.0 }
  0xf2   :  { %v464_v41 = vpop.permute.xlu1 %463 }
  0xf3   :  { %v441_v17 = vadd.f32 %v440_v1, %v439_v56 }
  0xf5   :  { %v443_v21 = vadd.f32 %v442_v58, %v441_v17 }
  0xf7   :  { %v445_v24 = vadd.f32 %v444_v22, %v443_v21 }
  0xf9   :  { %v447_v28 = vadd.f32 %v446_v25, %v445_v24 }
  0xfb   :  { %v449_v31 = vadd.f32 %v448_v29, %v447_v28 }
  0xfd   :  { %v451_v33 = vadd.f32 %v450_v32, %v449_v31 }
  0xff   :  { %v453_v35 = vadd.f32 %v452_v34, %v451_v33 }
 0x101   :  { %v454_v36 = vrot.slane %v453_v35, 4 }
 0x103   :  { %v455_v37 = vadd.f32 %v454_v36, %v453_v35 }
 0x105   :  { %v456_v38 = vrot.slane %v455_v37, 2 }
 0x107   :  { %v457_v39 = vadd.f32 %v456_v38, %v455_v37 }
 0x109   :  { %v458_v40 = vrot.slane %v457_v39, 1 }
 0x10b   :  { %v459_v43 = vadd.f32 %v458_v40, %v457_v39 }
 0x10d   :  { %v466_v42 = vadd.f32 %v464_v41, %v459_v43 }
 0x10f   :  { %468 = vst.msk [vmem:[#allocation2] sm:$0x1] %vm467_vm3, %v466_v42 }
 0x110   :  { %568 = shalt.err (!%p565_p4)
}
 0x111   :  { %s569_s27 = scalar_lea.hbm %s766_s3, 16 }
 0x112   :  { %p570_p5 = scmp.ne.s32.totalorder %s766_s3, %s569_s27  ;;  %p573_p6 = scmp.lt.u32.totalorder %s569_s27, %s766_s3 }
 0x114   :  { %p575_p7 = pnand %p573_p6, %p570_p5 }
 0x116   :  { %578 = shalt.err (!%p575_p7)
}
 0x117   :  { %478 = dma.vmem_to_hbm [thread:$0]  %s476_s22, 16, %s766_s3, [#allocation3]  }
 0x118   :  { %579 = dma.done.wait [#allocation3], 16  }
 0x119   :  { %580 = vsyncadd [#allocation3], 4294967280 }
 0x11a   :  { %482 = vsyncpa [#allocation3], 1 }

</bundles_post_ra>
